<compile_context>
chip_gen: v6e
topology: v6e:2x2x1
jax: 0.10.0
libtpu: 0.0.40
codegen_flags: <defaults>
</compile_context>

<pallas_src>
import numpy as np
import jax
import jax.numpy as jnp
from jax.experimental import pallas as pl
from jax.experimental.pallas import tpu as pltpu


# ----------------------------------------------------------------------------
# Fused 3-layer MLP kernel: (Linear -> ReLU -> Linear -> ReLU -> Linear)
# MXU inputs may be f32 or bf16; accumulation / bias / ReLU are f32 on the VPU.
# ----------------------------------------------------------------------------
def actor_mlp_kernel(x_ref, w1_ref, b1_ref, w2_ref, b2_ref, w3_ref, b3_ref, o_ref):
    x = x_ref[...]                                                     # (TB, S)
    h1 = jnp.dot(x, w1_ref[...], preferred_element_type=jnp.float32)  # (TB, H) f32
    h1 = jnp.maximum(h1 + b1_ref[...], 0.0)
    h2 = jnp.dot(h1.astype(w2_ref.dtype), w2_ref[...],
                 preferred_element_type=jnp.float32)                  # (TB, H) f32
    h2 = jnp.maximum(h2 + b2_ref[...], 0.0)
    out = jnp.dot(h2.astype(w3_ref.dtype), w3_ref[...],
                  preferred_element_type=jnp.float32) + b3_ref[...]   # (TB, A) f32
    o_ref[...] = out.astype(o_ref.dtype)


# ----------------------------------------------------------------------------
# Helpers
# ----------------------------------------------------------------------------
def _round_up(n, m):
    return ((n + m - 1) // m) * m


def _cdiv(a, b):
    return -(-a // b)


def _default_mxu_dtype():
    """bf16 MXU path by default on v5e (lowest HBM BW + multi-pass f32 MXU)."""
    try:
        kind = jax.devices()[0].device_kind.lower()
    except Exception:
        return jnp.float32
    if "v5 lite" in kind or "v5e" in kind or "v5litepod" in kind:
        return jnp.bfloat16
    return jnp.float32


def prepare_actor_params(params, mxu_dtype=None):
    """One-time (per policy update) cast of weights/biases for the kernel.

    params: dict with w1 (S,H), w2 (H,H), w3 (H,A) already in (in, out) layout
            and biases b1/b2/b3 of shape (1,H)/(1,H)/(1,A) (or (H,)/(A,)).
    """
    if mxu_dtype is None:
        mxu_dtype = _default_mxu_dtype()
    return {
        "w1": jnp.asarray(params["w1"]).astype(mxu_dtype),
        "w2": jnp.asarray(params["w2"]).astype(mxu_dtype),
        "w3": jnp.asarray(params["w3"]).astype(mxu_dtype),
        "b1": jnp.asarray(params["b1"]).astype(jnp.float32).reshape(1, -1),
        "b2": jnp.asarray(params["b2"]).astype(jnp.float32).reshape(1, -1),
        "b3": jnp.asarray(params["b3"]).astype(jnp.float32).reshape(1, -1),
    }


# ----------------------------------------------------------------------------
# Forward wrapper: batch-only tiling, VMEM-resident weights, lane-exact output.
# ----------------------------------------------------------------------------
def actor_forward(x, prepared, *, block_b=2048, out_dtype=jnp.float32):
    """x: (B, state_dim); prepared: output of prepare_actor_params."""
    B, S = x.shape
    w1, w2, w3 = prepared["w1"], prepared["w2"], prepared["w3"]
    b1, b2, b3 = prepared["b1"], prepared["b2"], prepared["b3"]
    H = w1.shape[1]
    A = w3.shape[1]
    assert w1.shape == (S, H) and w2.shape == (H, H) and w3.shape == (H, A)

    in_dtype = w1.dtype

    # ---- batch tiling: minimal padding, megacore-friendly ----
    B8 = _round_up(B, 8)
    n_steps = max(_cdiv(B8, block_b), 1)
    if n_steps == 1 and B8 >= 2048:
        n_steps = 2                       # keep both v7x TensorCores busy
    TB = _round_up(_cdiv(B8, n_steps), 8)
    B_pad = TB * n_steps                  # wastes < 8 rows per grid step

    xp = x.astype(in_dtype)
    if B_pad != B:
        xp = jnp.pad(xp, ((0, B_pad - B), (0, 0)))

    itemsize_in = jnp.dtype(in_dtype).itemsize
    itemsize_out = jnp.dtype(out_dtype).itemsize
    weight_bytes = (S * H + H * H + H * A) * itemsize_in + (2 * H + A) * 4
    cost = pl.CostEstimate(
        flops=2 * B_pad * (S * H + H * H + H * A),
        transcendentals=0,
        bytes_accessed=(B_pad * S * itemsize_in + weight_bytes
                        + B_pad * A * itemsize_out),
    )

    # VMEM estimate: resident weights (single-buffered) + double-buffered x/out
    # tiles + f32 intermediates.  Only override the scoped limit when needed.
    vmem_est = (weight_bytes
                + 2 * TB * S * itemsize_in
                + 2 * TB * A * itemsize_out
                + 3 * TB * H * 4)
    vmem_limit = (int(min(2 * vmem_est, 100 * 1024 * 1024))
                  if vmem_est > 24 * 1024 * 1024 else None)

    compiler_params = pltpu.CompilerParams(
        dimension_semantics=("parallel",),   # megacore sharding on v7x
        vmem_limit_bytes=vmem_limit,
    )

    def build(use_buffered):
        resident_kwargs = {}
        if use_buffered and hasattr(pl, "Buffered"):
            # Constant index_map => no point double-buffering these blocks.
            resident_kwargs["pipeline_mode"] = pl.Buffered(1)

        def resident(shape):
            return pl.BlockSpec(shape, lambda i: (0, 0), **resident_kwargs)

        return pl.pallas_call(
            actor_mlp_kernel,
            out_shape=jax.ShapeDtypeStruct((B_pad, A), out_dtype),
            grid=(n_steps,),
            in_specs=[
                pl.BlockSpec((TB, S), lambda i: (i, 0)),   # x: tiled over batch
                resident((S, H)), resident((1, H)),        # w1, b1 (VMEM-resident)
                resident((H, H)), resident((1, H)),        # w2, b2
                resident((H, A)), resident((1, A)),        # w3, b3
            ],
            out_specs=pl.BlockSpec((TB, A), lambda i: (i, 0)),
            compiler_params=compiler_params,
            cost_estimate=cost,
        )

    try:
        out_padded = build(True)(xp, w1, b1, w2, b2, w3, b3)
    except Exception:
        # Fallback if pl.Buffered(1) / pipeline_mode is unsupported here.
        out_padded = build(False)(xp, w1, b1, w2, b2, w3, b3)

    return out_padded[:B] if B_pad != B else out_padded


def actor_get_action(x, prepared, action_low, action_high, **kwargs):
    """Equivalent of Actor.get_action: clamp(forward(x), low, high)."""
    return jnp.clip(actor_forward(x, prepared, **kwargs), action_low, action_high)


# ----------------------------------------------------------------------------
# Deterministic init mirroring Actor._init_weights (orthogonal, gain sqrt(2),
# zero bias), reproduced in JAX.
# ----------------------------------------------------------------------------
def orthogonal_init(key, out_features, in_features, gain):
    rows, cols = out_features, in_features
    transpose = rows < cols
    shape = (cols, rows) if transpose else (rows, cols)
    a = jax.random.normal(key, shape, dtype=jnp.float32)
    q, r = jnp.linalg.qr(a)
    d = jnp.sign(jnp.diagonal(r))
    d = jnp.where(d == 0, 1.0, d)   # strict sign convention (avoid zeroed column)
    q = q * d[None, :]
    if transpose:
        q = q.T
    return gain * q  # (out_features, in_features), PyTorch layout


def init_actor_params(key, state_dim, hidden_size, action_dim):
    gain = float(np.sqrt(2.0))
    k1, k2, k3 = jax.random.split(key, 3)
    # PyTorch layout (out, in) -> transpose to (in, out) for the kernel.
    w1 = orthogonal_init(k1, hidden_size, state_dim, gain).T    # (S, H)
    w2 = orthogonal_init(k2, hidden_size, hidden_size, gain).T  # (H, H)
    w3 = orthogonal_init(k3, action_dim, hidden_size, gain).T   # (H, A)
    return {
        "w1": w1, "b1": jnp.zeros((1, hidden_size), jnp.float32),
        "w2": w2, "b2": jnp.zeros((1, hidden_size), jnp.float32),
        "w3": w3, "b3": jnp.zeros((1, action_dim), jnp.float32),
    }


if __name__ == "__main__":
    batch = 2
    state_dim = 8
    hidden_size = 32
    action_dim = 4

    key = jax.random.PRNGKey(0)
    kx, kp, kb = jax.random.split(key, 3)
    x = jax.random.normal(kx, (batch, state_dim), dtype=jnp.float32)
    params = init_actor_params(kp, state_dim, hidden_size, action_dim)

    def ref_forward(xx, p):  # pure-JAX reference, nn.Linear semantics
        h1 = jnp.maximum(xx @ p["w1"] + p["b1"], 0.0)
        h2 = jnp.maximum(h1 @ p["w2"] + p["b2"], 0.0)
        return h2 @ p["w3"] + p["b3"]

    ref = ref_forward(x, params)

    # Exact f32-MXU path.
    prep_f32 = prepare_actor_params(params, mxu_dtype=jnp.float32)
    out_f32 = actor_forward(x, prep_f32)
    jax.block_until_ready(out_f32)
    np.testing.assert_allclose(np.asarray(out_f32), np.asarray(ref),
                               rtol=1e-5, atol=1e-5)
    assert out_f32.shape == (batch, action_dim)

    # bf16-MXU / f32-accumulate throughput path (default on v5e).
    prep_bf16 = prepare_actor_params(params, mxu_dtype=jnp.bfloat16)
    out_bf16 = actor_forward(x, prep_bf16)
    jax.block_until_ready(out_bf16)
    np.testing.assert_allclose(np.asarray(out_bf16), np.asarray(ref),
                               rtol=5e-2, atol=2e-1)
    assert out_bf16.shape == (batch, action_dim)

    # Multi-step grid path (remainder policy + batch tiling) on a larger batch.
    xb = jax.random.normal(kb, (300, state_dim), dtype=jnp.float32)
    out_big = actor_forward(xb, prep_f32, block_b=128)   # forces a 3-step grid
    jax.block_until_ready(out_big)
    np.testing.assert_allclose(np.asarray(out_big),
                               np.asarray(ref_forward(xb, params)),
                               rtol=1e-5, atol=1e-5)
    assert out_big.shape == (300, action_dim)

    # get_action (clamp) path, pure-JAX clip around the kernel output.
    act_low = -jnp.ones((action_dim,), jnp.float32)
    act_high = jnp.ones((action_dim,), jnp.float32)
    a = actor_get_action(x, prep_f32, act_low, act_high)
    jax.block_until_ready(a)
    assert a.shape == (batch, action_dim)

    print("KERNEL_OK")
</pallas_src>

<mosaic_0001>
module attributes {stable_mosaic.version = 11 : i64} {
  func.func @actor_mlp_kernel(%arg0: i32, %arg1: memref<8x8xf32, #tpu.memory_space<vmem>>, %arg2: memref<8x32xf32, #tpu.memory_space<vmem>>, %arg3: memref<1x32xf32, #tpu.memory_space<vmem>>, %arg4: memref<32x32xf32, #tpu.memory_space<vmem>>, %arg5: memref<1x32xf32, #tpu.memory_space<vmem>>, %arg6: memref<32x4xf32, #tpu.memory_space<vmem>>, %arg7: memref<1x4xf32, #tpu.memory_space<vmem>>, %arg8: memref<8x4xf32, #tpu.memory_space<vmem>>) attributes {dimension_semantics = [#tpu.dimension_semantics<parallel>], iteration_bounds = array<i64: 1>, scalar_prefetch = 0 : i64, scratch_operands = 0 : i64, tpu.core_type = #tpu.core_type<tc>, window_params = [{transform_indices = @transform_0, window_bounds = array<i64: 8, 8>}, {pipeline_mode = #tpu.pipeline_mode<synchronous>, transform_indices = @transform_1, window_bounds = array<i64: 8, 32>}, {pipeline_mode = #tpu.pipeline_mode<synchronous>, transform_indices = @transform_2, window_bounds = array<i64: 1, 32>}, {pipeline_mode = #tpu.pipeline_mode<synchronous>, transform_indices = @transform_3, window_bounds = array<i64: 32, 32>}, {pipeline_mode = #tpu.pipeline_mode<synchronous>, transform_indices = @transform_4, window_bounds = array<i64: 1, 32>}, {pipeline_mode = #tpu.pipeline_mode<synchronous>, transform_indices = @transform_5, window_bounds = array<i64: 32, 4>}, {pipeline_mode = #tpu.pipeline_mode<synchronous>, transform_indices = @transform_6, window_bounds = array<i64: 1, 4>}, {transform_indices = @transform_7, window_bounds = array<i64: 8, 4>}]} {
    %c0 = arith.constant 0 : index
    %c0_0 = arith.constant 0 : index
    %0 = vector.load %arg1[%c0, %c0_0] : memref<8x8xf32, #tpu.memory_space<vmem>>, vector<8x8xf32>
    %c0_1 = arith.constant 0 : index
    %c0_2 = arith.constant 0 : index
    %1 = vector.load %arg2[%c0_1, %c0_2] : memref<8x32xf32, #tpu.memory_space<vmem>>, vector<8x32xf32>
    %cst = arith.constant dense<0.000000e+00> : vector<8x32xf32>
    %2 = tpu.matmul %0, %1, %cst {dimension_numbers = #tpu.dot_dimension_numbers<[1], [0], [0], [1], [0, 0, 1, 1], [], []>} : vector<8x8xf32>, vector<8x32xf32>, vector<8x32xf32> -> vector<8x32xf32>
    %c0_3 = arith.constant 0 : index
    %c0_4 = arith.constant 0 : index
    %3 = vector.load %arg3[%c0_3, %c0_4] : memref<1x32xf32, #tpu.memory_space<vmem>>, vector<1x32xf32>
    %4 = vector.broadcast %3 : vector<1x32xf32> to vector<8x32xf32>
    %5 = arith.addf %2, %4 : vector<8x32xf32>
    %cst_5 = arith.constant 0.000000e+00 : f32
    %6 = vector.broadcast %cst_5 : f32 to vector<8x32xf32>
    %7 = arith.maximumf %5, %6 : vector<8x32xf32>
    %c0_6 = arith.constant 0 : index
    %c0_7 = arith.constant 0 : index
    %8 = vector.load %arg4[%c0_6, %c0_7] : memref<32x32xf32, #tpu.memory_space<vmem>>, vector<32x32xf32>
    %cst_8 = arith.constant dense<0.000000e+00> : vector<8x32xf32>
    %9 = tpu.matmul %7, %8, %cst_8 {dimension_numbers = #tpu.dot_dimension_numbers<[1], [0], [0], [1], [0, 0, 1, 1], [], []>} : vector<8x32xf32>, vector<32x32xf32>, vector<8x32xf32> -> vector<8x32xf32>
    %c0_9 = arith.constant 0 : index
    %c0_10 = arith.constant 0 : index
    %10 = vector.load %arg5[%c0_9, %c0_10] : memref<1x32xf32, #tpu.memory_space<vmem>>, vector<1x32xf32>
    %11 = vector.broadcast %10 : vector<1x32xf32> to vector<8x32xf32>
    %12 = arith.addf %9, %11 : vector<8x32xf32>
    %cst_11 = arith.constant 0.000000e+00 : f32
    %13 = vector.broadcast %cst_11 : f32 to vector<8x32xf32>
    %14 = arith.maximumf %12, %13 : vector<8x32xf32>
    %c0_12 = arith.constant 0 : index
    %c0_13 = arith.constant 0 : index
    %15 = vector.load %arg6[%c0_12, %c0_13] : memref<32x4xf32, #tpu.memory_space<vmem>>, vector<32x4xf32>
    %cst_14 = arith.constant dense<0.000000e+00> : vector<8x4xf32>
    %16 = tpu.matmul %14, %15, %cst_14 {dimension_numbers = #tpu.dot_dimension_numbers<[1], [0], [0], [1], [0, 0, 1, 1], [], []>} : vector<8x32xf32>, vector<32x4xf32>, vector<8x4xf32> -> vector<8x4xf32>
    %c0_15 = arith.constant 0 : index
    %c0_16 = arith.constant 0 : index
    %17 = vector.load %arg7[%c0_15, %c0_16] : memref<1x4xf32, #tpu.memory_space<vmem>>, vector<1x4xf32>
    %18 = vector.broadcast %17 : vector<1x4xf32> to vector<8x4xf32>
    %19 = arith.addf %16, %18 : vector<8x4xf32>
    %c0_17 = arith.constant 0 : index
    %c0_18 = arith.constant 0 : index
    %20 = vector.load %arg8[%c0_17, %c0_18] : memref<8x4xf32, #tpu.memory_space<vmem>>, vector<8x4xf32>
    tpu.vector_store %arg8[%c0_17, %c0_18], %19 {strides = array<i32>} : memref<8x4xf32, #tpu.memory_space<vmem>>, vector<8x4xf32>,
    return
  }
  func.func @transform_0(%arg0: i32) -> (i32, i32) {
    %c0_i32 = arith.constant 0 : i32
    %c0_i32_0 = arith.constant 0 : i32
    return %arg0, %c0_i32 : i32, i32
  }
  func.func @transform_1(%arg0: i32) -> (i32, i32) {
    %c0_i32 = arith.constant 0 : i32
    %c0_i32_0 = arith.constant 0 : i32
    %c0_i32_1 = arith.constant 0 : i32
    return %c0_i32, %c0_i32_0 : i32, i32
  }
  func.func @transform_2(%arg0: i32) -> (i32, i32) {
    %c0_i32 = arith.constant 0 : i32
    %c0_i32_0 = arith.constant 0 : i32
    %c0_i32_1 = arith.constant 0 : i32
    return %c0_i32, %c0_i32_0 : i32, i32
  }
  func.func @transform_3(%arg0: i32) -> (i32, i32) {
    %c0_i32 = arith.constant 0 : i32
    %c0_i32_0 = arith.constant 0 : i32
    %c0_i32_1 = arith.constant 0 : i32
    return %c0_i32, %c0_i32_0 : i32, i32
  }
  func.func @transform_4(%arg0: i32) -> (i32, i32) {
    %c0_i32 = arith.constant 0 : i32
    %c0_i32_0 = arith.constant 0 : i32
    %c0_i32_1 = arith.constant 0 : i32
    return %c0_i32, %c0_i32_0 : i32, i32
  }
  func.func @transform_5(%arg0: i32) -> (i32, i32) {
    %c0_i32 = arith.constant 0 : i32
    %c0_i32_0 = arith.constant 0 : i32
    %c0_i32_1 = arith.constant 0 : i32
    return %c0_i32, %c0_i32_0 : i32, i32
  }
  func.func @transform_6(%arg0: i32) -> (i32, i32) {
    %c0_i32 = arith.constant 0 : i32
    %c0_i32_0 = arith.constant 0 : i32
    %c0_i32_1 = arith.constant 0 : i32
    return %c0_i32, %c0_i32_0 : i32, i32
  }
  func.func @transform_7(%arg0: i32) -> (i32, i32) {
    %c0_i32 = arith.constant 0 : i32
    %c0_i32_0 = arith.constant 0 : i32
    return %arg0, %c0_i32 : i32, i32
  }
}

module attributes {stable_mosaic.version = 11 : i64} {
  func.func @actor_mlp_kernel(%arg0: i32, %arg1: memref<8x8xf32, #tpu.memory_space<vmem>>, %arg2: memref<8x32xf32, #tpu.memory_space<vmem>>, %arg3: memref<1x32xf32, #tpu.memory_space<vmem>>, %arg4: memref<32x32xf32, #tpu.memory_space<vmem>>, %arg5: memref<1x32xf32, #tpu.memory_space<vmem>>, %arg6: memref<32x4xf32, #tpu.memory_space<vmem>>, %arg7: memref<1x4xf32, #tpu.memory_space<vmem>>, %arg8: memref<8x4xf32, #tpu.memory_space<vmem>>) attributes {dimension_semantics = [#tpu.dimension_semantics<parallel>], iteration_bounds = array<i64: 1>, scalar_prefetch = 0 : i64, scratch_operands = 0 : i64, tpu.core_type = #tpu.core_type<tc>, window_params = [{transform_indices = @transform_0, window_bounds = array<i64: 8, 8>}, {pipeline_mode = #tpu.pipeline_mode<synchronous>, transform_indices = @transform_1, window_bounds = array<i64: 8, 32>}, {pipeline_mode = #tpu.pipeline_mode<synchronous>, transform_indices = @transform_2, window_bounds = array<i64: 1, 32>}, {pipeline_mode = #tpu.pipeline_mode<synchronous>, transform_indices = @transform_3, window_bounds = array<i64: 32, 32>}, {pipeline_mode = #tpu.pipeline_mode<synchronous>, transform_indices = @transform_4, window_bounds = array<i64: 1, 32>}, {pipeline_mode = #tpu.pipeline_mode<synchronous>, transform_indices = @transform_5, window_bounds = array<i64: 32, 4>}, {pipeline_mode = #tpu.pipeline_mode<synchronous>, transform_indices = @transform_6, window_bounds = array<i64: 1, 4>}, {transform_indices = @transform_7, window_bounds = array<i64: 8, 4>}]} {
    %c0 = arith.constant 0 : index
    %c0_0 = arith.constant 0 : index
    %0 = vector.load %arg1[%c0, %c0_0] : memref<8x8xf32, #tpu.memory_space<vmem>>, vector<8x8xf32>
    %c0_1 = arith.constant 0 : index
    %c0_2 = arith.constant 0 : index
    %1 = vector.load %arg2[%c0_1, %c0_2] : memref<8x32xf32, #tpu.memory_space<vmem>>, vector<8x32xf32>
    %cst = arith.constant dense<0.000000e+00> : vector<8x32xf32>
    %2 = tpu.matmul %0, %1, %cst {dimension_numbers = #tpu.dot_dimension_numbers<[1], [0], [0], [1], [0, 0, 1, 1], [], []>} : vector<8x8xf32>, vector<8x32xf32>, vector<8x32xf32> -> vector<8x32xf32>
    %c0_3 = arith.constant 0 : index
    %c0_4 = arith.constant 0 : index
    %3 = vector.load %arg3[%c0_3, %c0_4] : memref<1x32xf32, #tpu.memory_space<vmem>>, vector<1x32xf32>
    %4 = vector.broadcast %3 : vector<1x32xf32> to vector<8x32xf32>
    %5 = arith.addf %2, %4 : vector<8x32xf32>
    %cst_5 = arith.constant 0.000000e+00 : f32
    %6 = vector.broadcast %cst_5 : f32 to vector<8x32xf32>
    %7 = arith.maximumf %5, %6 : vector<8x32xf32>
    %c0_6 = arith.constant 0 : index
    %c0_7 = arith.constant 0 : index
    %8 = vector.load %arg4[%c0_6, %c0_7] : memref<32x32xf32, #tpu.memory_space<vmem>>, vector<32x32xf32>
    %cst_8 = arith.constant dense<0.000000e+00> : vector<8x32xf32>
    %9 = tpu.matmul %7, %8, %cst_8 {dimension_numbers = #tpu.dot_dimension_numbers<[1], [0], [0], [1], [0, 0, 1, 1], [], []>} : vector<8x32xf32>, vector<32x32xf32>, vector<8x32xf32> -> vector<8x32xf32>
    %c0_9 = arith.constant 0 : index
    %c0_10 = arith.constant 0 : index
    %10 = vector.load %arg5[%c0_9, %c0_10] : memref<1x32xf32, #tpu.memory_space<vmem>>, vector<1x32xf32>
    %11 = vector.broadcast %10 : vector<1x32xf32> to vector<8x32xf32>
    %12 = arith.addf %9, %11 : vector<8x32xf32>
    %cst_11 = arith.constant 0.000000e+00 : f32
    %13 = vector.broadcast %cst_11 : f32 to vector<8x32xf32>
    %14 = arith.maximumf %12, %13 : vector<8x32xf32>
    %c0_12 = arith.constant 0 : index
    %c0_13 = arith.constant 0 : index
    %15 = vector.load %arg6[%c0_12, %c0_13] : memref<32x4xf32, #tpu.memory_space<vmem>>, vector<32x4xf32>
    %cst_14 = arith.constant dense<0.000000e+00> : vector<8x4xf32>
    %16 = tpu.matmul %14, %15, %cst_14 {dimension_numbers = #tpu.dot_dimension_numbers<[1], [0], [0], [1], [0, 0, 1, 1], [], []>} : vector<8x32xf32>, vector<32x4xf32>, vector<8x4xf32> -> vector<8x4xf32>
    %c0_15 = arith.constant 0 : index
    %c0_16 = arith.constant 0 : index
    %17 = vector.load %arg7[%c0_15, %c0_16] : memref<1x4xf32, #tpu.memory_space<vmem>>, vector<1x4xf32>
    %18 = vector.broadcast %17 : vector<1x4xf32> to vector<8x4xf32>
    %19 = arith.addf %16, %18 : vector<8x4xf32>
    %c0_17 = arith.constant 0 : index
    %c0_18 = arith.constant 0 : index
    %20 = vector.load %arg8[%c0_17, %c0_18] : memref<8x4xf32, #tpu.memory_space<vmem>>, vector<8x4xf32>
    tpu.vector_store %arg8[%c0_17, %c0_18], %19 {strides = array<i32>} : memref<8x4xf32, #tpu.memory_space<vmem>>, vector<8x4xf32>,
    return
  }
  func.func @transform_0(%arg0: i32) -> (i32, i32) {
    %c0_i32 = arith.constant 0 : i32
    %c0_i32_0 = arith.constant 0 : i32
    return %arg0, %c0_i32 : i32, i32
  }
  func.func @transform_1(%arg0: i32) -> (i32, i32) {
    %c0_i32 = arith.constant 0 : i32
    %c0_i32_0 = arith.constant 0 : i32
    %c0_i32_1 = arith.constant 0 : i32
    return %c0_i32, %c0_i32_0 : i32, i32
  }
  func.func @transform_2(%arg0: i32) -> (i32, i32) {
    %c0_i32 = arith.constant 0 : i32
    %c0_i32_0 = arith.constant 0 : i32
    %c0_i32_1 = arith.constant 0 : i32
    return %c0_i32, %c0_i32_0 : i32, i32
  }
  func.func @transform_3(%arg0: i32) -> (i32, i32) {
    %c0_i32 = arith.constant 0 : i32
    %c0_i32_0 = arith.constant 0 : i32
    %c0_i32_1 = arith.constant 0 : i32
    return %c0_i32, %c0_i32_0 : i32, i32
  }
  func.func @transform_4(%arg0: i32) -> (i32, i32) {
    %c0_i32 = arith.constant 0 : i32
    %c0_i32_0 = arith.constant 0 : i32
    %c0_i32_1 = arith.constant 0 : i32
    return %c0_i32, %c0_i32_0 : i32, i32
  }
  func.func @transform_5(%arg0: i32) -> (i32, i32) {
    %c0_i32 = arith.constant 0 : i32
    %c0_i32_0 = arith.constant 0 : i32
    %c0_i32_1 = arith.constant 0 : i32
    return %c0_i32, %c0_i32_0 : i32, i32
  }
  func.func @transform_6(%arg0: i32) -> (i32, i32) {
    %c0_i32 = arith.constant 0 : i32
    %c0_i32_0 = arith.constant 0 : i32
    %c0_i32_1 = arith.constant 0 : i32
    return %c0_i32, %c0_i32_0 : i32, i32
  }
  func.func @transform_7(%arg0: i32) -> (i32, i32) {
    %c0_i32 = arith.constant 0 : i32
    %c0_i32_0 = arith.constant 0 : i32
    return %arg0, %c0_i32 : i32, i32
  }
}

</mosaic_0001>

<bundles_post_ra>
// kernel: tpu_custom_call.1
= control target key start
LH: loop header
LB: loop body
LE: loop exit
PB: predicated region body
PF: predicated region fallthrough
CT: control target
= control target key end

     0   :  { %12 = vsyncpa [#allocation3], 0  ;;  %s493_s0 = inlined_call_operand.vmem [shape: f32[8,8], index: 0, kind: input, shape index: {}]   ;;  %s494_s1 = inlined_call_operand.hbm [shape: f32[8,32], index: 1, kind: input, shape index: {}]   ;;  %s495_s2 = inlined_call_operand.vmem [shape: f32[1,32], index: 2, kind: input, shape index: {}]   ;;  %s496_s3 = inlined_call_operand.vmem [shape: f32[32,32], index: 3, kind: input, shape index: {}]   ;;  %s497_s4 = inlined_call_operand.hbm [shape: f32[1,32], index: 4, kind: input, shape index: {}]   ;;  %s498_s5 = inlined_call_operand.vmem [shape: f32[32,4], index: 5, kind: input, shape index: {}]   ;;  %s499_s6 = inlined_call_operand.vmem [shape: f32[1,4], index: 6, kind: input, shape index: {}]   ;;  %s500_s7 = inlined_call_operand.vmem [shape: f32[8,4], index: 7, kind: output, shape index: {}]  }
   0x1   :  { %13 = vsyncpa [#allocation5], 0  ;;  %s405_s24 = smov [#allocation2]   ;;  %s406_s26 = smov [#allocation4]  }
   0x2   :  { %s22_s25 = sshll.u32 %s405_s24, 4  ;;  %s36_s27 = sshll.u32 %s406_s26, 4  ;;  %s23_s25 = int_to_ptr.vmem [resolvable:$true] %s22_s25  ;;  %s37_s27 = int_to_ptr.vmem [resolvable:$true] %s36_s27 }
   0x3   :  { %s369_s28 = scalar_lea.vmem %s23_s25, 128  ;;  %p374_p1 = scmp.lt.s32.totalorder %s23_s25, %s23_s25 }
   0x4   :  { %p370_p0 = scmp.ne.s32.totalorder %s23_s25, %s369_s28  ;;  %p375_p2 = scmp.lt.s32.totalorder %s369_s28, %s369_s28 }
   0x6   :  { %p376_p3 = por %p375_p2, %p374_p1 }
   0x8   :  { %p377_p4 = pnand %p376_p3, %p370_p0 }
   0xa   :  { %380 = shalt.err (!%p377_p4)
}
   0xb   :  { %25 = dma.hbm_to_vmem [thread:$0]  %s494_s1, 128, %s23_s25, [#allocation3]  }
   0xc   :  { %s389_s8 = scalar_lea.vmem %s37_s27, 16  ;;  %s393_s9 = scalar_lea.vmem %s37_s27, 32 }
   0xd   :  { %p390_p5 = scmp.ne.s32.totalorder %s37_s27, %s389_s8  ;;  %p394_p6 = scmp.lt.s32.totalorder %s37_s27, %s37_s27 }
   0xe   :  { %p395_p7 = scmp.lt.s32.totalorder %s393_s9, %s389_s8 }
  0x10   :  { %p396_p8 = por %p395_p7, %p394_p6 }
  0x12   :  { %p397_p9 = pnand %p396_p8, %p390_p5 }
  0x14   :  { %400 = shalt.err (!%p397_p9)
}
  0x15   :  { %39 = dma.hbm_to_vmem [thread:$0]  %s497_s4, 16, %s37_s27, [#allocation5]  }
  0x16   :  { %401 = dma.done.wait [#allocation3], 128  }
  0x17   :  { %402 = vsyncadd [#allocation3], 4294967168 }
  0x18   :  { %403 = dma.done.wait [#allocation5], 16  }
  0x19   :  { %404 = vsyncadd [#allocation5], 4294967280  ;;  %v407_v0 = vmov 0.0   ;;  %vm408_vm0 = vmmov 0   ;;  %vm59_vm1 = vcmask 64512   ;;  %v51_v1 = vld [vmem:[#allocation2] sm:$0xff] }
  0x1a   :  { %330 = vmatprep.subr.mxu0 %v407_v0  ;;  %332 = vmatprep.mubr.msk.f32.mxu0 %vm408_vm0, %v407_v0  ;;  %v50_v2 = vld [vmem:[%s493_s0] sm:$0xff]  ;;  %v137_v3 = vld [vmem:[%s496_s3 + $0x18] sm:$0xff]  ;;  %v136_v4 = vld [vmem:[%s496_s3 + $0x10] sm:$0xff]  ;;  %vm145_vm2 = vcmask 261120   ;;  %vm304_vm3 = vcmask 31744  }
  0x1b   :  { %335 = vmatprep.subr.mxu1 %v407_v0  ;;  %343 = vmatprep.mubr.msk.f32.mxu1 %vm408_vm0, %v407_v0  ;;  %v135_v5 = vld [vmem:[%s496_s3 + $0x8] sm:$0xff]  ;;  %v134_v6 = vld [vmem:[%s496_s3] sm:$0xff]  ;;  %v223_v7 = vld [vmem:[%s498_s5 + $0x18] sm:$0xff] }
  0x1c   :  { %331 = vmatpush3.msra.mxu0 %v51_v1  ;;  %336 = vmatpush3.msra.mxu1 %v137_v3  ;;  %v312_v8 = vld [vmem:[%s495_s2] ss:$0 sm:$0xff]  ;;  %v222_v13 = vld [vmem:[%s498_s5 + $0x10] sm:$0xff]  ;;  %v221_v14 = vld [vmem:[%s498_s5 + $0x8] sm:$0xff] }
  0x1d   :  { %333 = vmatmul.mubr.msk.f32.vlgmr.msra.gmra.mxu0 %vm59_vm1, %v50_v2  ;;  %337 = vmatprep.subr.mxu1 %v407_v0  ;;  %v220_v15 = vld [vmem:[%s498_s5] sm:$0xff]  ;;  %v314_v16 = vld [vmem:[#allocation4] ss:$0 sm:$0xff] }
  0x1e   :  { %346 = vmatprep.subr.mxu0 %v407_v0  ;;  %354 = vmatprep.mubr.msk.f32.mxu0 %vm408_vm0, %v407_v0  ;;  %v316_v21 = vld [vmem:[%s499_s6] ss:$0 sm:$0xff] }
  0x1f   :  { %338 = vmatpush3.msra.mxu1 %v136_v4  ;;  %347 = vmatpush3.msra.mxu0 %v223_v7 }
  0x20   :  { %339 = vmatprep.subr.mxu1 %v407_v0  ;;  %348 = vmatprep.subr.mxu0 %v407_v0 }
  0x21   :  { %340 = vmatpush3.msra.mxu1 %v135_v5  ;;  %349 = vmatpush3.msra.mxu0 %v222_v13 }
  0x22   :  { %341 = vmatprep.subr.mxu1 %v407_v0  ;;  %350 = vmatprep.subr.mxu0 %v407_v0 }
  0x23   :  { %342 = vmatpush3.msra.mxu1 %v134_v6  ;;  %351 = vmatpush3.msra.mxu0 %v221_v14 }
  0x24   :  { %352 = vmatprep.subr.mxu0 %v407_v0 }
  0x25   :  { %353 = vmatpush3.msra.mxu0 %v220_v15 }
  0xdd   :  { %v129_v9 = vpop.f32.mrf.mxu0 }
  0xde   :  { %v130_v10 = vadd.f32 %v312_v8, %v129_v9 }
  0xdf   :  { %v334_v11 = vpop.f32.mrf.mxu0 }
  0xe0   :  { %v133_v12 = vmax.f32 %v130_v10, 0.0 }
  0xe2   :  { %344 = vmatmul.mubr.msk.f32.vlgmr.msra.gmra.mxu1 %vm145_vm2, %v133_v12 }
 0x1a2   :  { %v215_v17 = vpop.f32.mrf.mxu1 }
 0x1a3   :  { %v216_v18 = vadd.f32 %v314_v16, %v215_v17 }
 0x1a4   :  { %v345_v19 = vpop.f32.mrf.mxu1 }
 0x1a5   :  { %v219_v20 = vmax.f32 %v216_v18, 0.0 }
 0x1a7   :  { %355 = vmatmul.mubr.msk.f32.vlgmr.msra.gmra.mxu0 %vm145_vm2, %v219_v20 }
 0x267   :  { %v300_v22 = vpop.f32.mrf.mxu0 }
 0x268   :  { %v301_v23 = vadd.f32 %v316_v21, %v300_v22 }
 0x269   :  { %v356_v24 = vpop.f32.mrf.mxu0 }
 0x26a   :  { %305 = vst.msk [vmem:[%s500_s7] sm:$0xff] %vm304_vm3, %v301_v23 }
 0x26b   :  { %310 = vsyncpa [#allocation3], 1 }
 0x26c   :  { %311 = vsyncpa [#allocation5], 1 }

// kernel: tpu_custom_call.1
= control target key start
LH: loop header
LB: loop body
LE: loop exit
PB: predicated region body
PF: predicated region fallthrough
CT: control target
= control target key end

     0   :  { %12 = vsyncpa [#allocation3], 0  ;;  %s493_s0 = inlined_call_operand.vmem [shape: f32[8,8], index: 0, kind: input, shape index: {}]   ;;  %s494_s1 = inlined_call_operand.hbm [shape: f32[8,32], index: 1, kind: input, shape index: {}]   ;;  %s495_s2 = inlined_call_operand.vmem [shape: f32[1,32], index: 2, kind: input, shape index: {}]   ;;  %s496_s3 = inlined_call_operand.vmem [shape: f32[32,32], index: 3, kind: input, shape index: {}]   ;;  %s497_s4 = inlined_call_operand.hbm [shape: f32[1,32], index: 4, kind: input, shape index: {}]   ;;  %s498_s5 = inlined_call_operand.vmem [shape: f32[32,4], index: 5, kind: input, shape index: {}]   ;;  %s499_s6 = inlined_call_operand.vmem [shape: f32[1,4], index: 6, kind: input, shape index: {}]   ;;  %s500_s7 = inlined_call_operand.vmem [shape: f32[8,4], index: 7, kind: output, shape index: {}]  }
   0x1   :  { %13 = vsyncpa [#allocation5], 0  ;;  %s405_s24 = smov [#allocation2]   ;;  %s406_s26 = smov [#allocation4]  }
   0x2   :  { %s22_s25 = sshll.u32 %s405_s24, 4  ;;  %s36_s27 = sshll.u32 %s406_s26, 4  ;;  %s23_s25 = int_to_ptr.vmem [resolvable:$true] %s22_s25  ;;  %s37_s27 = int_to_ptr.vmem [resolvable:$true] %s36_s27 }
   0x3   :  { %s369_s28 = scalar_lea.vmem %s23_s25, 128  ;;  %p374_p1 = scmp.lt.s32.totalorder %s23_s25, %s23_s25 }
   0x4   :  { %p370_p0 = scmp.ne.s32.totalorder %s23_s25, %s369_s28  ;;  %p375_p2 = scmp.lt.s32.totalorder %s369_s28, %s369_s28 }
   0x6   :  { %p376_p3 = por %p375_p2, %p374_p1 }
   0x8   :  { %p377_p4 = pnand %p376_p3, %p370_p0 }
   0xa   :  { %380 = shalt.err (!%p377_p4)
}
   0xb   :  { %25 = dma.hbm_to_vmem [thread:$0]  %s494_s1, 128, %s23_s25, [#allocation3]  }
   0xc   :  { %s389_s8 = scalar_lea.vmem %s37_s27, 16  ;;  %s393_s9 = scalar_lea.vmem %s37_s27, 32 }
   0xd   :  { %p390_p5 = scmp.ne.s32.totalorder %s37_s27, %s389_s8  ;;  %p394_p6 = scmp.lt.s32.totalorder %s37_s27, %s37_s27 }
   0xe   :  { %p395_p7 = scmp.lt.s32.totalorder %s393_s9, %s389_s8 }
  0x10   :  { %p396_p8 = por %p395_p7, %p394_p6 }
  0x12   :  { %p397_p9 = pnand %p396_p8, %p390_p5 }
  0x14   :  { %400 = shalt.err (!%p397_p9)
}
  0x15   :  { %39 = dma.hbm_to_vmem [thread:$0]  %s497_s4, 16, %s37_s27, [#allocation5]  }
  0x16   :  { %401 = dma.done.wait [#allocation3], 128  }
  0x17   :  { %402 = vsyncadd [#allocation3], 4294967168 }
  0x18   :  { %403 = dma.done.wait [#allocation5], 16  }
  0x19   :  { %404 = vsyncadd [#allocation5], 4294967280  ;;  %v407_v0 = vmov 0.0   ;;  %vm408_vm0 = vmmov 0   ;;  %vm59_vm1 = vcmask 64512   ;;  %v51_v1 = vld [vmem:[#allocation2] sm:$0xff] }
  0x1a   :  { %330 = vmatprep.subr.mxu0 %v407_v0  ;;  %332 = vmatprep.mubr.msk.f32.mxu0 %vm408_vm0, %v407_v0  ;;  %v50_v2 = vld [vmem:[%s493_s0] sm:$0xff]  ;;  %v137_v3 = vld [vmem:[%s496_s3 + $0x18] sm:$0xff]  ;;  %v136_v4 = vld [vmem:[%s496_s3 + $0x10] sm:$0xff]  ;;  %vm145_vm2 = vcmask 261120   ;;  %vm304_vm3 = vcmask 31744  }
  0x1b   :  { %335 = vmatprep.subr.mxu1 %v407_v0  ;;  %343 = vmatprep.mubr.msk.f32.mxu1 %vm408_vm0, %v407_v0  ;;  %v135_v5 = vld [vmem:[%s496_s3 + $0x8] sm:$0xff]  ;;  %v134_v6 = vld [vmem:[%s496_s3] sm:$0xff]  ;;  %v223_v7 = vld [vmem:[%s498_s5 + $0x18] sm:$0xff] }
  0x1c   :  { %331 = vmatpush3.msra.mxu0 %v51_v1  ;;  %336 = vmatpush3.msra.mxu1 %v137_v3  ;;  %v312_v8 = vld [vmem:[%s495_s2] ss:$0 sm:$0xff]  ;;  %v222_v13 = vld [vmem:[%s498_s5 + $0x10] sm:$0xff]  ;;  %v221_v14 = vld [vmem:[%s498_s5 + $0x8] sm:$0xff] }
  0x1d   :  { %333 = vmatmul.mubr.msk.f32.vlgmr.msra.gmra.mxu0 %vm59_vm1, %v50_v2  ;;  %337 = vmatprep.subr.mxu1 %v407_v0  ;;  %v220_v15 = vld [vmem:[%s498_s5] sm:$0xff]  ;;  %v314_v16 = vld [vmem:[#allocation4] ss:$0 sm:$0xff] }
  0x1e   :  { %346 = vmatprep.subr.mxu0 %v407_v0  ;;  %354 = vmatprep.mubr.msk.f32.mxu0 %vm408_vm0, %v407_v0  ;;  %v316_v21 = vld [vmem:[%s499_s6] ss:$0 sm:$0xff] }
  0x1f   :  { %338 = vmatpush3.msra.mxu1 %v136_v4  ;;  %347 = vmatpush3.msra.mxu0 %v223_v7 }
  0x20   :  { %339 = vmatprep.subr.mxu1 %v407_v0  ;;  %348 = vmatprep.subr.mxu0 %v407_v0 }
  0x21   :  { %340 = vmatpush3.msra.mxu1 %v135_v5  ;;  %349 = vmatpush3.msra.mxu0 %v222_v13 }
  0x22   :  { %341 = vmatprep.subr.mxu1 %v407_v0  ;;  %350 = vmatprep.subr.mxu0 %v407_v0 }
  0x23   :  { %342 = vmatpush3.msra.mxu1 %v134_v6  ;;  %351 = vmatpush3.msra.mxu0 %v221_v14 }
  0x24   :  { %352 = vmatprep.subr.mxu0 %v407_v0 }
  0x25   :  { %353 = vmatpush3.msra.mxu0 %v220_v15 }
  0xdd   :  { %v129_v9 = vpop.f32.mrf.mxu0 }
  0xde   :  { %v130_v10 = vadd.f32 %v312_v8, %v129_v9 }
  0xdf   :  { %v334_v11 = vpop.f32.mrf.mxu0 }
  0xe0   :  { %v133_v12 = vmax.f32 %v130_v10, 0.0 }
  0xe2   :  { %344 = vmatmul.mubr.msk.f32.vlgmr.msra.gmra.mxu1 %vm145_vm2, %v133_v12 }
 0x1a2   :  { %v215_v17 = vpop.f32.mrf.mxu1 }
 0x1a3   :  { %v216_v18 = vadd.f32 %v314_v16, %v215_v17 }
 0x1a4   :  { %v345_v19 = vpop.f32.mrf.mxu1 }
 0x1a5   :  { %v219_v20 = vmax.f32 %v216_v18, 0.0 }
 0x1a7   :  { %355 = vmatmul.mubr.msk.f32.vlgmr.msra.gmra.mxu0 %vm145_vm2, %v219_v20 }
 0x267   :  { %v300_v22 = vpop.f32.mrf.mxu0 }
 0x268   :  { %v301_v23 = vadd.f32 %v316_v21, %v300_v22 }
 0x269   :  { %v356_v24 = vpop.f32.mrf.mxu0 }
 0x26a   :  { %305 = vst.msk [vmem:[%s500_s7] sm:$0xff] %vm304_vm3, %v301_v23 }
 0x26b   :  { %310 = vsyncpa [#allocation3], 1 }
 0x26c   :  { %311 = vsyncpa [#allocation5], 1 }

</bundles_post_ra>
